<compile_context>
chip_gen: v7x
topology: tpu7x:2x2x1
jax: 0.10.0
libtpu: 0.0.40
codegen_flags: <defaults>
</compile_context>

<pallas_src>
import functools
import math

import numpy as np
import jax
import jax.numpy as jnp
from jax.experimental import pallas as pl
from jax.experimental.pallas import tpu as pltpu

OSCILLATOR_PERIOD = 60
N_JOINTS = 6

GROUP = 8              # lanes per batch element (6 joints + timestep + pad)
TS_SLOT = 6            # lane slot carrying the timestep
PER_ROW = 128 // GROUP # 16 batch elements per 128-lane row
ROW_TILE = 4096        # max rows per grid step: 4096*128*4 B = 2 MiB per buffer
SMALL_BATCH_CUTOFF = 256  # below this, fused XLA beats the pallas_call launch


def _cdiv(a, b):
    return -(-a // b)


def _round_up(a, m):
    return _cdiv(a, m) * m


# TODO(synk): NCAP_damping is referenced but not defined in the source module;
# deterministic stand-in: damping(delt, proximity) = delt * proximity.
def ncap_damping(delt, proximity):
    return delt * proximity


def _choose_tiling(rows):
    """rows is a multiple of 8. Returns (rows_per_block, n_blocks)."""
    if rows <= 64:                         # tiny problem: single small block
        return rows, 1
    # Blocks come in pairs so the "parallel" grid axis keeps both v7x
    # TensorCores busy; each block capped at ROW_TILE rows (2 MiB/buffer).
    n_pairs = _cdiv(rows, 2 * ROW_TILE)
    tr = min(ROW_TILE, _round_up(_cdiv(rows, 2 * n_pairs), 8))
    return tr, _cdiv(rows, tr)


def _make_kernel(k, half, period):
    """Fused swimmer kernel with oscillator constants baked in at trace time."""
    k = float(k)
    half = float(half)
    period = float(period)
    inv_period = 1.0 / period

    def kernel(w_ref, x_ref, out_ref):
        # w_ref  : SMEM f32[4]       = [w_prop, w_osc, w_ipsi, w_contra]
        # x_ref  : VMEM f32[TR, 128]  lane = 8*b_local + slot
        #          slot 0..5 = joint positions, slot 6 = timestep, slot 7 = 0
        # out_ref: VMEM f32[TR, 128]  slot 0..5 = torques, slots 6,7 = discarded
        w_prop = w_ref[0]
        w_osc = w_ref[1]
        w_ipsi = w_ref[2]
        w_contra = w_ref[3]

        x = x_ref[...]

        # proprioception: joint i reads joint i-1 (single XLU lane roll;
        # wrap/cross-group contamination only lands on slots 0, 6, 7, which are
        # overwritten by the oscillator or discarded).
        prev = pltpu.roll(x, shift=1, axis=1)
        prev_d = jnp.clip(prev, 0.0, 1.0)
        prev_v = -jnp.clip(prev, -1.0, 0.0)

        # head oscillator: timestep sits at slot 6; rotate it onto slot 0
        # (shift 122 == -6 mod 128) so each head lane sees its own timestep.
        ts = pltpu.roll(x, shift=128 - TS_SLOT, axis=1)
        ts_r = jnp.round(ts)
        phase = ts_r - jnp.floor(ts_r * inv_period) * period
        # guard f32 rounding of the reciprocal-multiply near multiples of the
        # period (keeps phase in [0, period), matching round().mod(period)).
        phase = jnp.where(phase < 0.0, phase + period, phase)
        phase = jnp.where(phase >= period, phase - period, phase)
        osc_d = jnp.where(phase < half, 1.0, 0.0)
        osc_v = 1.0 - osc_d
        osc_d = osc_d - k * osc_d
        # NOTE: intentionally uses the *already damped* osc_d, exactly like the
        # PyTorch source (and the reference below) — do not "fix".
        osc_v = osc_v - k * osc_d

        lane = jax.lax.broadcasted_iota(jnp.int32, x.shape, 1)
        is_head = jnp.bitwise_and(lane, GROUP - 1) == 0

        # b-neurons: head joint driven by the oscillator, others by
        # proprioception; graded (clip to [0,1]).
        bn_d = jnp.clip(jnp.where(is_head, osc_d * w_osc, prev_d * w_prop), 0.0, 1.0)
        bn_v = jnp.clip(jnp.where(is_head, osc_v * w_osc, prev_v * w_prop), 0.0, 1.0)

        # muscles: ipsilateral excitation, contralateral inhibition; graded.
        m_d = jnp.clip(bn_d * w_ipsi + bn_v * w_contra, 0.0, 1.0)
        m_v = jnp.clip(bn_v * w_ipsi + bn_d * w_contra, 0.0, 1.0)

        out_ref[...] = m_d - m_v

    return kernel


@functools.partial(jax.jit, static_argnames=("oscillator_period", "proximity"))
def _forward_pallas(joint_pos, timesteps, params, *, oscillator_period, proximity):
    joint_pos = jnp.asarray(joint_pos, jnp.float32)
    B, J = joint_pos.shape
    assert J <= TS_SLOT, "lane-packed layout supports up to 6 joints per group"
    timesteps = jnp.asarray(timesteps, jnp.float32).reshape(B, 1)

    # weight constraints (exc = clamp min 0, inh = clamp max 0), as in forward()
    w_prop = jnp.maximum(params["bneuron_prop"], 0.0).reshape(())
    w_osc = jnp.maximum(params["bneuron_osc"], 0.0).reshape(())
    w_ipsi = jnp.maximum(params["muscle_ipsi"], 0.0).reshape(())
    w_contra = jnp.minimum(params["muscle_contra"], 0.0).reshape(())
    weights = jnp.stack([w_prop, w_osc, w_ipsi, w_contra]).astype(jnp.float32)

    # oscillator constants baked into the kernel at trace time
    k = 2.0 * math.pi * (1.0 / oscillator_period) * ncap_damping(1.0, proximity)
    half = float(oscillator_period // 2)
    kernel = _make_kernel(k, half, float(oscillator_period))

    # tiling over lane-packed rows (16 batch elements / row)
    rows_raw = _round_up(_cdiv(B, PER_ROW), 8)
    tr, n_blocks = _choose_tiling(rows_raw)
    rows = tr * n_blocks
    Bp = rows * PER_ROW

    # pack: (Bp, 8) row-major -> free reshape to (rows, 128); no transpose.
    parts = [joint_pos]
    if J < TS_SLOT:
        parts.append(jnp.zeros((B, TS_SLOT - J), jnp.float32))
    parts.append(timesteps)
    parts.append(jnp.zeros((B, GROUP - TS_SLOT - 1), jnp.float32))
    x = jnp.concatenate(parts, axis=1)
    x = jnp.pad(x, ((0, Bp - B), (0, 0)))
    x = x.reshape(rows, 128)

    out = pl.pallas_call(
        kernel,
        out_shape=jax.ShapeDtypeStruct((rows, 128), jnp.float32),
        grid=(n_blocks,),
        in_specs=[
            pl.BlockSpec(memory_space=pltpu.MemorySpace.SMEM),  # 4 learned weights
            pl.BlockSpec((tr, 128), lambda i: (i, 0)),          # packed joints+ts
        ],
        out_specs=pl.BlockSpec((tr, 128), lambda i: (i, 0)),
        compiler_params=pltpu.CompilerParams(
            dimension_semantics=("parallel",)),
    )(weights, x)

    return out.reshape(Bp, GROUP)[:B, :J]


def swimmer_reference(joint_pos, timesteps, params, *, oscillator_period=OSCILLATOR_PERIOD,
                      proximity=1.0):
    """Pure-JAX port of SwimmerModule.forward (default config) for verification."""
    joint_pos = jnp.asarray(joint_pos, jnp.float32)
    timesteps = jnp.asarray(timesteps, jnp.float32)
    w_prop = jnp.maximum(params["bneuron_prop"], 0.0)
    w_osc = jnp.maximum(params["bneuron_osc"], 0.0)
    w_ipsi = jnp.maximum(params["muscle_ipsi"], 0.0)
    w_contra = jnp.minimum(params["muscle_contra"], 0.0)

    jp_d = jnp.clip(joint_pos, 0.0, 1.0)
    jp_v = -jnp.clip(joint_pos, -1.0, 0.0)

    k = 2.0 * math.pi * (1.0 / oscillator_period) * ncap_damping(1.0, proximity)
    phase = jnp.mod(jnp.round(timesteps), oscillator_period)
    osc_d = jnp.where(phase < oscillator_period // 2, 1.0, 0.0)
    osc_v = 1.0 - osc_d
    osc_d = osc_d - k * osc_d
    osc_v = osc_v - k * osc_d   # matches the PyTorch source: uses updated osc_d

    torques = []
    for i in range(joint_pos.shape[-1]):
        bd = jnp.zeros_like(joint_pos[..., 0:1])
        bv = jnp.zeros_like(joint_pos[..., 0:1])
        if i > 0:
            bd = bd + jp_d[..., i - 1:i] * w_prop
            bv = bv + jp_v[..., i - 1:i] * w_prop
        if i == 0:
            bd = bd + osc_d * w_osc
            bv = bv + osc_v * w_osc
        bd = jnp.clip(bd, 0.0, 1.0)
        bv = jnp.clip(bv, 0.0, 1.0)
        md = jnp.clip(bd * w_ipsi + bv * w_contra, 0.0, 1.0)
        mv = jnp.clip(bv * w_ipsi + bd * w_contra, 0.0, 1.0)
        torques.append(md - mv)
    return jnp.concatenate(torques, -1)


# fused pure-XLA path for small batches (a handful of VPU ops beats the
# pallas_call launch + packing glue below ~256 batch elements)
_forward_xla = jax.jit(swimmer_reference, static_argnames=("oscillator_period", "proximity"))


def swimmer_forward(joint_pos, timesteps, params, *, oscillator_period=OSCILLATOR_PERIOD,
                    proximity=1.0, use_pallas=None):
    """joint_pos: (B, n_joints) in [-1,1]; timesteps: (B, 1). Returns (B, n_joints)."""
    B = joint_pos.shape[0]
    if use_pallas is None:
        use_pallas = B > SMALL_BATCH_CUTOFF
    if use_pallas:
        return _forward_pallas(joint_pos, timesteps, params,
                               oscillator_period=oscillator_period, proximity=proximity)
    return _forward_xla(joint_pos, timesteps, params,
                        oscillator_period=oscillator_period, proximity=proximity)


if __name__ == "__main__":
    # deterministic parameter init (constant init, shared weights)
    params = {
        "bneuron_prop": jnp.float32(1.0),
        "bneuron_osc": jnp.float32(1.0),
        "muscle_ipsi": jnp.float32(1.0),
        "muscle_contra": jnp.float32(-1.0),
    }

    key = jax.random.PRNGKey(0)
    k1, k2, k3, k4 = jax.random.split(key, 4)

    # small shapes, forced through the Pallas path (single-block grid)
    B = 8
    joint_pos = jax.random.uniform(k1, (B, N_JOINTS), minval=-1.0, maxval=1.0,
                                   dtype=jnp.float32)
    timesteps = jax.random.randint(k2, (B, 1), 0, 500).astype(jnp.float32)
    out = jax.block_until_ready(
        swimmer_forward(joint_pos, timesteps, params, use_pallas=True))
    ref = swimmer_reference(joint_pos, timesteps, params)
    np.testing.assert_allclose(np.asarray(out), np.asarray(ref), rtol=1e-5, atol=1e-5)

    # odd-sized larger batch: exercises padding, the phase guard at large
    # timesteps, and the 2-block "parallel" grid (v7x megacore sharding)
    B2 = 5000
    joint_pos2 = jax.random.uniform(k3, (B2, N_JOINTS), minval=-1.0, maxval=1.0,
                                    dtype=jnp.float32)
    timesteps2 = jax.random.randint(k4, (B2, 1), 0, 100000).astype(jnp.float32)
    out2 = jax.block_until_ready(
        swimmer_forward(joint_pos2, timesteps2, params, use_pallas=True))
    ref2 = swimmer_reference(joint_pos2, timesteps2, params)
    np.testing.assert_allclose(np.asarray(out2), np.asarray(ref2), rtol=1e-5, atol=1e-5)

    # auto-dispatch (small batch -> fused XLA path) sanity check
    out3 = jax.block_until_ready(swimmer_forward(joint_pos, timesteps, params))
    np.testing.assert_allclose(np.asarray(out3), np.asarray(ref), rtol=1e-5, atol=1e-5)

    # TODO(synk): connection logging (log_activity) and the internal python
    # `self.timestep` counter are host-side stateful bookkeeping with no kernel
    # equivalent; the timesteps-tensor path is implemented instead.
    print("KERNEL_OK")
</pallas_src>

<mosaic_0001>
module attributes {stable_mosaic.version = 11 : i64} {
  func.func @kernel(%arg0: i32, %arg1: memref<4xf32, #tpu.memory_space<smem>>, %arg2: memref<8x128xf32, #tpu.memory_space<vmem>>, %arg3: memref<8x128xf32, #tpu.memory_space<vmem>>) attributes {dimension_semantics = [#tpu.dimension_semantics<parallel>], iteration_bounds = array<i64: 1>, scalar_prefetch = 0 : i64, scratch_operands = 0 : i64, tpu.core_type = #tpu.core_type<tc>, window_params = [{transform_indices = @transform_0, window_bounds = array<i64: 4>}, {transform_indices = @transform_1, window_bounds = array<i64: 8, 128>}, {transform_indices = @transform_2, window_bounds = array<i64: 8, 128>}]} {
    %c0 = arith.constant 0 : index
    %0 = memref.load %arg1[%c0] : memref<4xf32, #tpu.memory_space<smem>>
    %c1 = arith.constant 1 : index
    %1 = memref.load %arg1[%c1] : memref<4xf32, #tpu.memory_space<smem>>
    %c2 = arith.constant 2 : index
    %2 = memref.load %arg1[%c2] : memref<4xf32, #tpu.memory_space<smem>>
    %c3 = arith.constant 3 : index
    %3 = memref.load %arg1[%c3] : memref<4xf32, #tpu.memory_space<smem>>
    %c0_0 = arith.constant 0 : index
    %c0_1 = arith.constant 0 : index
    %4 = vector.load %arg2[%c0_0, %c0_1] : memref<8x128xf32, #tpu.memory_space<vmem>>, vector<8x128xf32>
    %c1_i32 = arith.constant 1 : i32
    %5 = tpu.dynamic_rotate %4 by %c1_i32 dim 1 : vector<8x128xf32>, i32 -> vector<8x128xf32>
    %cst = arith.constant 0.000000e+00 : f32
    %cst_2 = arith.constant 1.000000e+00 : f32
    %6 = vector.broadcast %cst : f32 to vector<8x128xf32>
    %7 = arith.maximumf %6, %5 : vector<8x128xf32>
    %8 = vector.broadcast %cst_2 : f32 to vector<8x128xf32>
    %9 = arith.minimumf %8, %7 : vector<8x128xf32>
    %cst_3 = arith.constant -1.000000e+00 : f32
    %cst_4 = arith.constant 0.000000e+00 : f32
    %10 = vector.broadcast %cst_3 : f32 to vector<8x128xf32>
    %11 = arith.maximumf %10, %5 : vector<8x128xf32>
    %12 = vector.broadcast %cst_4 : f32 to vector<8x128xf32>
    %13 = arith.minimumf %12, %11 : vector<8x128xf32>
    %cst_5 = arith.constant 0.000000e+00 : f32
    %14 = vector.broadcast %cst_5 : f32 to vector<8x128xf32>
    %15 = arith.subf %14, %13 : vector<8x128xf32>
    %c122_i32 = arith.constant 122 : i32
    %16 = tpu.dynamic_rotate %4 by %c122_i32 dim 1 : vector<8x128xf32>, i32 -> vector<8x128xf32>
    %17 = math.roundeven %16 : vector<8x128xf32>
    %cst_6 = arith.constant 0.0166666675 : f32
    %18 = vector.broadcast %cst_6 : f32 to vector<8x128xf32>
    %19 = arith.mulf %17, %18 : vector<8x128xf32>
    %20 = math.floor %19 : vector<8x128xf32>
    %cst_7 = arith.constant 6.000000e+01 : f32
    %21 = vector.broadcast %cst_7 : f32 to vector<8x128xf32>
    %22 = arith.mulf %20, %21 : vector<8x128xf32>
    %23 = arith.subf %17, %22 : vector<8x128xf32>
    %cst_8 = arith.constant 0.000000e+00 : f32
    %24 = vector.broadcast %cst_8 : f32 to vector<8x128xf32>
    %25 = arith.cmpf olt, %23, %24 : vector<8x128xf32>
    %cst_9 = arith.constant 6.000000e+01 : f32
    %26 = vector.broadcast %cst_9 : f32 to vector<8x128xf32>
    %27 = arith.addf %23, %26 : vector<8x128xf32>
    %28 = arith.select %25, %27, %23 : vector<8x128xi1>, vector<8x128xf32>
    %cst_10 = arith.constant 6.000000e+01 : f32
    %29 = vector.broadcast %cst_10 : f32 to vector<8x128xf32>
    %30 = arith.cmpf oge, %28, %29 : vector<8x128xf32>
    %cst_11 = arith.constant 6.000000e+01 : f32
    %31 = vector.broadcast %cst_11 : f32 to vector<8x128xf32>
    %32 = arith.subf %28, %31 : vector<8x128xf32>
    %33 = arith.select %30, %32, %28 : vector<8x128xi1>, vector<8x128xf32>
    %cst_12 = arith.constant 3.000000e+01 : f32
    %34 = vector.broadcast %cst_12 : f32 to vector<8x128xf32>
    %35 = arith.cmpf olt, %33, %34 : vector<8x128xf32>
    %cst_13 = arith.constant 1.000000e+00 : f32
    %cst_14 = arith.constant 0.000000e+00 : f32
    %36 = vector.broadcast %cst_13 : f32 to vector<8x128xf32>
    %37 = vector.broadcast %cst_14 : f32 to vector<8x128xf32>
    %38 = arith.select %35, %36, %37 : vector<8x128xi1>, vector<8x128xf32>
    %cst_15 = arith.constant 1.000000e+00 : f32
    %39 = vector.broadcast %cst_15 : f32 to vector<8x128xf32>
    %40 = arith.subf %39, %38 : vector<8x128xf32>
    %cst_16 = arith.constant 0.104719758 : f32
    %41 = vector.broadcast %cst_16 : f32 to vector<8x128xf32>
    %42 = arith.mulf %41, %38 : vector<8x128xf32>
    %43 = arith.subf %38, %42 : vector<8x128xf32>
    %cst_17 = arith.constant 0.104719758 : f32
    %44 = vector.broadcast %cst_17 : f32 to vector<8x128xf32>
    %45 = arith.mulf %44, %43 : vector<8x128xf32>
    %46 = arith.subf %40, %45 : vector<8x128xf32>
    %47 = tpu.iota {dimensions = array<i32: 1>} : vector<8x128xi32>
    %c7_i32 = arith.constant 7 : i32
    %48 = vector.broadcast %c7_i32 : i32 to vector<8x128xi32>
    %49 = arith.andi %47, %48 : vector<8x128xi32>
    %c0_i32 = arith.constant 0 : i32
    %50 = vector.broadcast %c0_i32 : i32 to vector<8x128xi32>
    %51 = arith.cmpi eq, %49, %50 : vector<8x128xi32>
    %52 = vector.broadcast %1 : f32 to vector<8x128xf32>
    %53 = arith.mulf %43, %52 : vector<8x128xf32>
    %54 = vector.broadcast %0 : f32 to vector<8x128xf32>
    %55 = arith.mulf %9, %54 : vector<8x128xf32>
    %56 = arith.select %51, %53, %55 : vector<8x128xi1>, vector<8x128xf32>
    %cst_18 = arith.constant 0.000000e+00 : f32
    %cst_19 = arith.constant 1.000000e+00 : f32
    %57 = vector.broadcast %cst_18 : f32 to vector<8x128xf32>
    %58 = arith.maximumf %57, %56 : vector<8x128xf32>
    %59 = vector.broadcast %cst_19 : f32 to vector<8x128xf32>
    %60 = arith.minimumf %59, %58 : vector<8x128xf32>
    %61 = vector.broadcast %1 : f32 to vector<8x128xf32>
    %62 = arith.mulf %46, %61 : vector<8x128xf32>
    %63 = vector.broadcast %0 : f32 to vector<8x128xf32>
    %64 = arith.mulf %15, %63 : vector<8x128xf32>
    %65 = arith.select %51, %62, %64 : vector<8x128xi1>, vector<8x128xf32>
    %cst_20 = arith.constant 0.000000e+00 : f32
    %cst_21 = arith.constant 1.000000e+00 : f32
    %66 = vector.broadcast %cst_20 : f32 to vector<8x128xf32>
    %67 = arith.maximumf %66, %65 : vector<8x128xf32>
    %68 = vector.broadcast %cst_21 : f32 to vector<8x128xf32>
    %69 = arith.minimumf %68, %67 : vector<8x128xf32>
    %70 = vector.broadcast %2 : f32 to vector<8x128xf32>
    %71 = arith.mulf %60, %70 : vector<8x128xf32>
    %72 = vector.broadcast %3 : f32 to vector<8x128xf32>
    %73 = arith.mulf %69, %72 : vector<8x128xf32>
    %74 = arith.addf %71, %73 : vector<8x128xf32>
    %cst_22 = arith.constant 0.000000e+00 : f32
    %cst_23 = arith.constant 1.000000e+00 : f32
    %75 = vector.broadcast %cst_22 : f32 to vector<8x128xf32>
    %76 = arith.maximumf %75, %74 : vector<8x128xf32>
    %77 = vector.broadcast %cst_23 : f32 to vector<8x128xf32>
    %78 = arith.minimumf %77, %76 : vector<8x128xf32>
    %79 = vector.broadcast %2 : f32 to vector<8x128xf32>
    %80 = arith.mulf %69, %79 : vector<8x128xf32>
    %81 = vector.broadcast %3 : f32 to vector<8x128xf32>
    %82 = arith.mulf %60, %81 : vector<8x128xf32>
    %83 = arith.addf %80, %82 : vector<8x128xf32>
    %cst_24 = arith.constant 0.000000e+00 : f32
    %cst_25 = arith.constant 1.000000e+00 : f32
    %84 = vector.broadcast %cst_24 : f32 to vector<8x128xf32>
    %85 = arith.maximumf %84, %83 : vector<8x128xf32>
    %86 = vector.broadcast %cst_25 : f32 to vector<8x128xf32>
    %87 = arith.minimumf %86, %85 : vector<8x128xf32>
    %88 = arith.subf %78, %87 : vector<8x128xf32>
    %c0_26 = arith.constant 0 : index
    %c0_27 = arith.constant 0 : index
    %89 = vector.load %arg3[%c0_26, %c0_27] : memref<8x128xf32, #tpu.memory_space<vmem>>, vector<8x128xf32>
    tpu.vector_store %arg3[%c0_26, %c0_27], %88 {strides = array<i32>} : memref<8x128xf32, #tpu.memory_space<vmem>>, vector<8x128xf32>,
    return
  }
  func.func @transform_0(%arg0: i32) -> i32 {
    %c0_i32 = arith.constant 0 : i32
    %c0_i32_0 = arith.constant 0 : i32
    return %c0_i32 : i32
  }
  func.func @transform_1(%arg0: i32) -> (i32, i32) {
    %c0_i32 = arith.constant 0 : i32
    %c0_i32_0 = arith.constant 0 : i32
    return %arg0, %c0_i32 : i32, i32
  }
  func.func @transform_2(%arg0: i32) -> (i32, i32) {
    %c0_i32 = arith.constant 0 : i32
    %c0_i32_0 = arith.constant 0 : i32
    return %arg0, %c0_i32 : i32, i32
  }
}

</mosaic_0001>

<bundles_post_ra>
// kernel: _forward_pallas.1
= control target key start
LH: loop header
LB: loop body
LE: loop exit
PB: predicated region body
PF: predicated region fallthrough
CT: control target
= control target key end

     0   :  { %7 = vsyncpa [#allocation3], 0  ;;  %s145_s0 = inlined_call_operand.vmem [shape: f32[4], index: 0, kind: input, shape index: {}]   ;;  %s146_s1 = inlined_call_operand.vmem [shape: f32[8,128], index: 1, kind: input, shape index: {}]   ;;  %s147_s2 = inlined_call_operand.vmem [shape: f32[8,128], index: 2, kind: output, shape index: {}]  }
   0x1   :  { %s14_s11 = sshll.u32 %s145_s0, 4  ;;  %s15_s11 = int_to_ptr.vmem [resolvable:$true] %s14_s11 }
   0x2   :  { %s100_s12 = scalar_lea.vmem %s15_s11, 16  ;;  %p105_p1 = scmp.lt.s32.totalorder %s15_s11, %s15_s11 }
   0x3   :  { %p101_p0 = scmp.ne.s32.totalorder %s15_s11, %s100_s12  ;;  %p106_p2 = scmp.lt.s32.totalorder %s100_s12, %s100_s12 }
   0x5   :  { %p107_p3 = por %p106_p2, %p105_p1 }
   0x7   :  { %p108_p4 = pnand %p107_p3, %p101_p0 }
   0x9   :  { %111 = shalt.err (!%p108_p4)
}
   0xa   :  { %s114_s13 = smov [#allocation2]  }
   0xb   :  { %17 = dma.vmem_to_smem %s15_s11, 16, %s114_s13, [#allocation3]  }
   0xc   :  { %112 = dma.done.wait [#allocation3], 16  }
   0xd   :  { %113 = vsyncadd [#allocation3], 4294967280 }
   0xe   :  { %23 = sfence }
   0xf   :  { %v28_v0 = vld [vmem:[%s146_s1] sm:$0xff]  ;;  %s115_s16 = smov 122   ;;  %s116_s0 = smov 1   ;;  %v56_v7 = vlaneseq  ;;  %v117_v18 = vmov 0.0  }
  0x10   :  { %36 = vrot.lane.b32.xlu0 %v28_v0, %s115_s16  ;;  %s139_s17 = sld [smem:[#allocation2]]  ;;  %s91_s18 = sld [smem:[#allocation2 + $0x1]] }
  0x11   :  { %v57_v14 = vand.u32 127, %v56_v7  ;;  %s92_s1 = sld [smem:[#allocation2 + $0x2]]  ;;  %s93_s19 = sld [smem:[#allocation2 + $0x3]] }
  0x13   :  { %v58_v20 = vand.u32 7, %v57_v14 }
  0x14   :  { %29 = vrot.lane.b32.xlu0 %v28_v0, %s116_s0 }
  0x15   :  { %vm59_vm3 = vcmp.eq.s32.totalorder %v58_v20, 0 }
  0x16   :  { %v62_v21 = vstv %s139_s17  ;;  %v60_v23 = vstv %s91_s18 }
  0x17   :  { %v72_v38 = vstv %s92_s1  ;;  %v74_v39 = vstv %s93_s19 }
  0x82   :  { %v37_v1 = vpop.permute.xlu0 %36 }
  0x83   :  { %v95_v2 = vround.rtne.f32 %v37_v1 }
  0x85   :  { %v39_v3 = vmul.f32 0.016666668, %v95_v2 }
  0x86   :  { %v30_v8 = vpop.permute.xlu0 %29 }
  0x87   :  { %v40_v4 = vfloor.f32 %v39_v3  ;;  %v31_v11 = vmax.f32 %v30_v8, 0.0  ;;  %v33_v12 = vmax.f32 %v30_v8, -1.0 }
  0x89   :  { %v41_v5 = vmul.f32 60.0, %v40_v4  ;;  %v32_v16 = vmin.f32 %v31_v11, 1.0  ;;  %v34_v17 = vmin.f32 %v33_v12, 0.0 }
  0x8b   :  { %v42_v6 = vsub.f32 %v95_v2, %v41_v5  ;;  %v35_v25 = vsub.f32 0.0, %v34_v17  ;;  %v63_v26 = vmul.f32 %v62_v21, %v32_v16 }
  0x8d   :  { %vm43_vm0 = vcmp.lt.f32.partialorder %v42_v6, 0.0  ;;  %v44_v9 = vadd.f32 60.0, %v42_v6  ;;  %v68_v32 = vmul.f32 %v62_v21, %v35_v25 }
  0x8f   :  { %v45_v10 = vsel %vm43_vm0, %v44_v9, %v42_v6 }
  0x90   :  { %vm46_vm1 = vcmp.ge.f32.partialorder %v45_v10, 60.0  ;;  %v94_v13 = vadd.f32 -60.0, %v45_v10 }
  0x92   :  { %v48_v15 = vsel %vm46_vm1, %v94_v13, %v45_v10 }
  0x93   :  { %vm49_vm2 = vcmp.lt.f32.partialorder %v48_v15, 30.0 }
  0x94   :  { %v50_v19 = vsel %vm49_vm2, 1.0, %v117_v18 }
  0x95   :  { %v52_v22 = vmul.f32 0.10471976, %v50_v19  ;;  %v51_v27 = vsub.f32 1.0, %v50_v19 }
  0x97   :  { %v53_v24 = vsub.f32 %v50_v19, %v52_v22 }
  0x99   :  { %v54_v28 = vmul.f32 0.10471976, %v53_v24  ;;  %v61_v29 = vmul.f32 %v60_v23, %v53_v24 }
  0x9b   :  { %v55_v30 = vsub.f32 %v51_v27, %v54_v28  ;;  %v64_v31 = vsel %vm59_vm3, %v61_v29, %v63_v26 }
  0x9c   :  { %v65_v33 = vmax.f32 %v64_v31, 0.0 }
  0x9d   :  { %v67_v34 = vmul.f32 %v60_v23, %v55_v30 }
  0x9e   :  { %v66_v36 = vmin.f32 %v65_v33, 1.0 }
  0x9f   :  { %v69_v35 = vsel %vm59_vm3, %v67_v34, %v68_v32 }
  0xa0   :  { %v70_v37 = vmax.f32 %v69_v35, 0.0  ;;  %v73_v41 = vmul.f32 %v72_v38, %v66_v36  ;;  %v80_v44 = vmul.f32 %v74_v39, %v66_v36 }
  0xa2   :  { %v71_v40 = vmin.f32 %v70_v37, 1.0 }
  0xa4   :  { %v75_v42 = vmul.f32 %v74_v39, %v71_v40  ;;  %v79_v43 = vmul.f32 %v72_v38, %v71_v40 }
  0xa6   :  { %v76_v45 = vadd.f32 %v75_v42, %v73_v41  ;;  %v81_v46 = vadd.f32 %v80_v44, %v79_v43 }
  0xa8   :  { %v77_v47 = vmax.f32 %v76_v45, 0.0  ;;  %v82_v48 = vmax.f32 %v81_v46, 0.0 }
  0xaa   :  { %v78_v49 = vmin.f32 %v77_v47, 1.0  ;;  %v83_v50 = vmin.f32 %v82_v48, 1.0 }
  0xac   :  { %v84_v51 = vsub.f32 %v78_v49, %v83_v50 }
  0xae   :  { %85 = vst [vmem:[%s147_s2] sm:$0xff] %v84_v51 }
  0xaf   :  { %90 = vsyncpa [#allocation3], 1 }

</bundles_post_ra>
